<compile_context>
chip_gen: v7x
topology: tpu7x:2x2x1
jax: 0.10.0
libtpu: 0.0.40
codegen_flags: <defaults>
</compile_context>

<pallas_src>
import functools

import jax
import jax.numpy as jnp
from jax.experimental import pallas as pl
from jax.experimental.pallas import tpu as pltpu


def _tpu_vmem_capacity_bytes():
    """Physical VMEM per TensorCore (128 MiB on v5e/v6e, 64 MiB on v7x)."""
    try:
        cap = int(getattr(pltpu.get_tpu_info(), "vmem_capacity_bytes", 0))
        if cap > 0:
            return cap
    except Exception:
        pass
    return 64 * 1024 * 1024  # conservative fallback = v7x per-core VMEM


def _vmem_limit_bytes():
    # Explicit scoped-VMEM limit: ~75% of physical (~96 MiB on v5e/v6e,
    # ~48 MiB on v7x) instead of the 16/32 MiB defaults.
    return (_tpu_vmem_capacity_bytes() * 3) // 4


def _pick_tb(batch, d, itemsize, block_rows=None):
    """Rows per grid step: as large as the double-buffered x tile allows."""
    if block_rows is None:
        # Lane axis pads to a multiple of 128 in VMEM.
        d_pad = ((max(d, 1) + 127) // 128) * 128
        # x is the only large operand and is double-buffered by the pipeline;
        # keep 2 * tile within ~75% of the scoped-VMEM limit, leaving the rest
        # for w / y / outputs / compiler scratch.
        per_buffer = (_vmem_limit_bytes() * 3 // 4) // 2
        tb = per_buffer // max(d_pad * itemsize, 1)
    else:
        tb = block_rows
    tb = max(8, (tb // 8) * 8)                    # multiple of 8 sublanes
    tb = min(tb, ((batch + 7) // 8) * 8)          # never bigger than padded B
    return max(tb, 8)


def _pred_row(x_ref, w_ref, b_scalar):
    """sigmoid(w @ x^T + b) for one (tb, D) tile -> (1, tb) float32.

    MXU contraction (f32 accumulation, no tile-sized f32 temporary); result is
    laid out along lanes so downstream stores are lane-dense.
    """
    logits = jax.lax.dot_general(
        w_ref[...], x_ref[...],
        dimension_numbers=(((1,), (1,)), ((), ())),
        preferred_element_type=jnp.float32)            # (1, tb)
    return jax.nn.sigmoid(logits + b_scalar)


def _pred_kernel(x_ref, w_ref, b_ref, o_ref):
    o_ref[...] = _pred_row(x_ref, w_ref, b_ref[0]).astype(o_ref.dtype)


def _fused_loss_kernel(x_ref, y_ref, w_ref, b_ref, loss_ref, *,
                       batch, tb, tiles_per_core, n_tiles, need_mask):
    c = pl.program_id(0)            # per-core partial-sum index ("parallel")
    i = pl.program_id(1)            # batch-tile index ("arbitrary" reduction)
    gt = c * tiles_per_core + i     # global tile index

    @pl.when(i == 0)
    def _():
        loss_ref[...] = jnp.zeros_like(loss_ref)

    pred = _pred_row(x_ref, w_ref, b_ref[0])            # (1, tb) f32
    d = pred - y_ref[...]                                # y already f32

    if need_mask:
        # Only the final real tile can be ragged; tiles past n_tiles are pure
        # padding (their x block index is clamped) and must contribute zero.
        @pl.when(gt < n_tiles - 1)
        def _():
            loss_ref[...] += jnp.sum(d * d, axis=(0, 1), keepdims=True)

        @pl.when(gt >= n_tiles - 1)
        def _():
            col = gt * tb + jax.lax.broadcasted_iota(jnp.int32, (1, tb), 1)
            dm = jnp.where(col < batch, d, 0.0)
            loss_ref[...] += jnp.sum(dm * dm, axis=(0, 1), keepdims=True)
    else:
        loss_ref[...] += jnp.sum(d * d, axis=(0, 1), keepdims=True)

    @pl.when(i == tiles_per_core - 1)
    def _():
        loss_ref[...] = loss_ref[...] / jnp.float32(batch)


def linear_sigmoid(x, w, b, block_rows=None):
    """Inference path: sigmoid(x @ w.T + b) -> [B, 1]."""
    B, D = x.shape
    tb = _pick_tb(B, D, x.dtype.itemsize, block_rows)
    n_tiles = pl.cdiv(B, tb)
    w = w.astype(x.dtype)
    b_flat = jnp.ravel(b).astype(jnp.float32)

    out = pl.pallas_call(
        _pred_kernel,
        out_shape=jax.ShapeDtypeStruct((n_tiles, 1, tb), x.dtype),
        grid_spec=pltpu.PrefetchScalarGridSpec(
            num_scalar_prefetch=0,
            grid=(n_tiles,),
            in_specs=[
                pl.BlockSpec((tb, D), lambda i: (i, 0)),
                pl.BlockSpec((1, D), lambda i: (0, 0)),
                pl.BlockSpec(memory_space=pltpu.MemorySpace.SMEM),  # bias
            ],
            # Lane-dense output block (1, tb): no masked partial stores.
            out_specs=pl.BlockSpec((None, 1, tb), lambda i: (i, 0, 0)),
        ),
        compiler_params=pltpu.CompilerParams(
            dimension_semantics=("parallel",),
            vmem_limit_bytes=_vmem_limit_bytes()),
    )(x, w, b_flat)
    # (n_tiles, 1, tb) -> [B, 1]; rows past B are padding from a ragged tile.
    return out.reshape(n_tiles * tb)[:B].reshape(B, 1)


def fused_mse_loss(x, y, w, b, block_rows=None):
    """Training path: mean((sigmoid(x @ w.T + b) - y)**2), fused in one kernel."""
    B, D = x.shape
    tb = _pick_tb(B, D, x.dtype.itemsize, block_rows)
    n_tiles = pl.cdiv(B, tb)
    # Leading "parallel" axis of 2 shards the reduction across v7x's two
    # TensorCores; on single-core v5e/v6e it runs sequentially (negligible).
    nc = min(2, n_tiles)
    tpc = pl.cdiv(n_tiles, nc)
    total_rows = nc * tpc * tb
    need_mask = total_rows != B

    w = w.astype(x.dtype)
    b_flat = jnp.ravel(b).astype(jnp.float32)
    # y is tiny: pad + reshape wrapper-side so each step reads a lane-dense
    # (1, tb) block instead of a masked (tb, 1) column.
    y_pad = jnp.pad(jnp.ravel(y).astype(jnp.float32),
                    (0, total_rows - B)).reshape(nc * tpc, 1, tb)

    kernel = functools.partial(
        _fused_loss_kernel, batch=B, tb=tb, tiles_per_core=tpc,
        n_tiles=n_tiles, need_mask=need_mask)

    def x_map(c, i):
        # Clamp phantom tiles (present only when n_tiles % nc != 0) onto the
        # last real tile; their contribution is masked to zero in-kernel.
        return (jnp.minimum(c * tpc + i, n_tiles - 1), 0)

    partials = pl.pallas_call(
        kernel,
        out_shape=jax.ShapeDtypeStruct((nc, 1, 1), jnp.float32),
        grid_spec=pltpu.PrefetchScalarGridSpec(
            num_scalar_prefetch=0,
            grid=(nc, tpc),
            in_specs=[
                pl.BlockSpec((tb, D), x_map),
                pl.BlockSpec((None, 1, tb), lambda c, i: (c * tpc + i, 0, 0)),
                pl.BlockSpec((1, D), lambda c, i: (0, 0)),
                pl.BlockSpec(memory_space=pltpu.MemorySpace.SMEM),  # bias
            ],
            # Resident per-core accumulator: same block for every step of the
            # reduction axis; zeroed at i==0, normalized at the last step.
            out_specs=pl.BlockSpec((None, 1, 1), lambda c, i: (c, 0, 0)),
        ),
        compiler_params=pltpu.CompilerParams(
            dimension_semantics=("parallel", "arbitrary"),
            vmem_limit_bytes=_vmem_limit_bytes()),
    )(x, y_pad, w, b_flat)
    # Each per-core partial is already divided by B; summing gives the mean.
    return jnp.sum(partials)


def my_torch_model_forward(params, x, y=None, block_rows=None):
    """Mirrors MyTorchModel.forward: sigmoid(Linear(x)); MSE if y is given."""
    if y is not None:
        return fused_mse_loss(x, y, params["w"], params["b"], block_rows)
    return linear_sigmoid(x, params["w"], params["b"], block_rows)


def init_params(key, input_size):
    # Deterministic init matching nn.Linear(input_size, 1) parameter shapes.
    kw, kb = jax.random.split(key)
    bound = 1.0 / jnp.sqrt(jnp.float32(input_size))
    w = jax.random.uniform(kw, (1, input_size), jnp.float32, -bound, bound)
    b = jax.random.uniform(kb, (1,), jnp.float32, -bound, bound)
    return {"w": w, "b": b}


if __name__ == "__main__":
    key = jax.random.PRNGKey(0)
    k_param, k_data = jax.random.split(key)

    input_size = 32
    params = init_params(k_param, input_size)

    # (batch, forced block_rows): aligned single-tile, ragged last tile, and a
    # forced multi-tile case exercising the 2-way core split + phantom tile.
    configs = [(8, None), (13, None), (52, 8)]

    for batch, block_rows in configs:
        k_data, kx, ky = jax.random.split(k_data, 3)
        x = jax.random.normal(kx, (batch, input_size), jnp.float32)
        y = jax.random.uniform(ky, (batch, 1), jnp.float32)

        # Inference path (y=None): sigmoid(linear(x)), shape [batch, 1].
        y_pred = my_torch_model_forward(params, x, block_rows=block_rows)
        # Training path: scalar MSE loss from the fused kernel.
        loss = my_torch_model_forward(params, x, y, block_rows=block_rows)
        jax.block_until_ready((y_pred, loss))

        # Cross-check against plain JAX reference.
        ref_pred = jax.nn.sigmoid(x @ params["w"].T + params["b"])
        ref_loss = jnp.mean((ref_pred - y) ** 2)
        assert y_pred.shape == (batch, 1)
        assert jnp.allclose(y_pred, ref_pred, atol=1e-5), \
            f"prediction mismatch (batch={batch})"
        assert jnp.allclose(loss, ref_loss, atol=1e-5, rtol=1e-5), \
            f"loss mismatch (batch={batch})"

    print("KERNEL_OK")
</pallas_src>

<mosaic_0001>
module attributes {stable_mosaic.version = 11 : i64} {
  func.func @_pred_kernel(%arg0: i32, %arg1: memref<8x32xf32, #tpu.memory_space<vmem>>, %arg2: memref<1x32xf32, #tpu.memory_space<vmem>>, %arg3: memref<1xf32, #tpu.memory_space<smem>>, %arg4: memref<1x1x8xf32, #tpu.memory_space<vmem>>) attributes {dimension_semantics = [#tpu.dimension_semantics<parallel>], iteration_bounds = array<i64: 1>, scalar_prefetch = 0 : i64, scratch_operands = 0 : i64, tpu.core_type = #tpu.core_type<tc>, window_params = [{transform_indices = @transform_0, window_bounds = array<i64: 8, 32>}, {pipeline_mode = #tpu.pipeline_mode<synchronous>, transform_indices = @transform_1, window_bounds = array<i64: 1, 32>}, {transform_indices = @transform_2, window_bounds = array<i64: 1>}, {transform_indices = @transform_3, window_bounds = array<i64: 1, 1, 8>}]} {
    %c0 = arith.constant 0 : index
    %0 = memref.load %arg3[%c0] : memref<1xf32, #tpu.memory_space<smem>>
    %c0_0 = arith.constant 0 : index
    %c0_1 = arith.constant 0 : index
    %1 = vector.load %arg2[%c0_0, %c0_1] : memref<1x32xf32, #tpu.memory_space<vmem>>, vector<1x32xf32>
    %c0_2 = arith.constant 0 : index
    %c0_3 = arith.constant 0 : index
    %2 = vector.load %arg1[%c0_2, %c0_3] : memref<8x32xf32, #tpu.memory_space<vmem>>, vector<8x32xf32>
    %cst = arith.constant dense<0.000000e+00> : vector<1x8xf32>
    %3 = tpu.matmul %1, %2, %cst {dimension_numbers = #tpu.dot_dimension_numbers<[1], [1], [0], [0], [0, 0, 1, 0], [], []>} : vector<1x32xf32>, vector<8x32xf32>, vector<1x8xf32> -> vector<1x8xf32>
    %4 = vector.broadcast %0 : f32 to vector<1x8xf32>
    %5 = arith.addf %3, %4 : vector<1x8xf32>
    %6 = arith.negf %5 : vector<1x8xf32>
    %7 = math.exp %6 : vector<1x8xf32>
    %cst_4 = arith.constant 1.000000e+00 : f32
    %8 = vector.broadcast %cst_4 : f32 to vector<1x8xf32>
    %9 = arith.addf %8, %7 : vector<1x8xf32>
    %10 = arith.divf %8, %9 : vector<1x8xf32>
    %c0_5 = arith.constant 0 : index
    %c0_6 = arith.constant 0 : index
    %c0_7 = arith.constant 0 : index
    %11 = vector.load %arg4[%c0_5, %c0_6, %c0_7] : memref<1x1x8xf32, #tpu.memory_space<vmem>>, vector<1x1x8xf32>
    %12 = vector.shape_cast %11 : vector<1x1x8xf32> to vector<1x8xf32>
    %13 = vector.shape_cast %10 : vector<1x8xf32> to vector<1x1x8xf32>
    tpu.vector_store %arg4[%c0_5, %c0_6, %c0_7], %13 {strides = array<i32>} : memref<1x1x8xf32, #tpu.memory_space<vmem>>, vector<1x1x8xf32>,
    return
  }
  func.func @transform_0(%arg0: i32) -> (i32, i32) {
    %c0_i32 = arith.constant 0 : i32
    %c0_i32_0 = arith.constant 0 : i32
    return %arg0, %c0_i32 : i32, i32
  }
  func.func @transform_1(%arg0: i32) -> (i32, i32) {
    %c0_i32 = arith.constant 0 : i32
    %c0_i32_0 = arith.constant 0 : i32
    %c0_i32_1 = arith.constant 0 : i32
    return %c0_i32, %c0_i32_0 : i32, i32
  }
  func.func @transform_2(%arg0: i32) -> i32 {
    %c0_i32 = arith.constant 0 : i32
    %c0_i32_0 = arith.constant 0 : i32
    return %c0_i32 : i32
  }
  func.func @transform_3(%arg0: i32) -> (i32, i32, i32) {
    %c0_i32 = arith.constant 0 : i32
    %c0_i32_0 = arith.constant 0 : i32
    %c0_i32_1 = arith.constant 0 : i32
    return %arg0, %c0_i32, %c0_i32_0 : i32, i32, i32
  }
}

</mosaic_0001>

<bundles_post_ra>
// kernel: tpu_custom_call.1
= control target key start
LH: loop header
LB: loop body
LE: loop exit
PB: predicated region body
PF: predicated region fallthrough
CT: control target
= control target key end

     0   :  { %9 = vsyncpa [#allocation4], 0  ;;  %s252_s0 = inlined_call_operand.hbm [shape: f32[8,32], index: 0, kind: input, shape index: {}]   ;;  %s253_s1 = inlined_call_operand.vmem [shape: f32[1,32], index: 1, kind: input, shape index: {}]   ;;  %s254_s2 = inlined_call_operand.<no memory space> [shape: f32[1], index: 2, kind: input, shape index: {}]   ;;  %s255_s3 = inlined_call_operand.hbm [shape: f32[1,1,8], index: 3, kind: output, shape index: {}]  }
   0x1   :  { %10 = vsyncpa [#allocation5], 0  ;;  %s198_s12 = smov [#allocation3]   ;;  %s150_s16 = scalar_lea.hbm %s252_s0, 128 }
   0x2   :  { %s17_s13 = sshll.u32 %s198_s12, 4  ;;  %p151_p0 = scmp.ne.s32.totalorder %s252_s0, %s150_s16  ;;  %s18_s13 = int_to_ptr.vmem [resolvable:$true] %s17_s13 }
   0x3   :  { %p154_p1 = scmp.lt.u32.totalorder %s150_s16, %s252_s0 }
   0x5   :  { %p156_p2 = pnand %p154_p1, %p151_p0 }
   0x7   :  { %159 = shalt.err (!%p156_p2)
}
   0x8   :  { %s160_s21 = scalar_lea.vmem %s18_s13, 128  ;;  %p165_p4 = scmp.lt.s32.totalorder %s18_s13, %s18_s13 }
   0x9   :  { %p161_p3 = scmp.ne.s32.totalorder %s18_s13, %s160_s21  ;;  %p166_p5 = scmp.lt.s32.totalorder %s160_s21, %s160_s21 }
   0xb   :  { %p167_p6 = por %p166_p5, %p165_p4 }
   0xd   :  { %p168_p7 = pnand %p167_p6, %p161_p3 }
   0xf   :  { %171 = shalt.err (!%p168_p7)
}
  0x10   :  { %20 = dma.hbm_to_vmem [thread:$0]  %s252_s0, 128, %s18_s13, [#allocation4]  }
  0x11   :  { %194 = dma.done.wait [#allocation4], 128  }
  0x12   :  { %195 = vsyncadd [#allocation4], 4294967168  ;;  %v199_v0 = vmov 0.0   ;;  %vm200_vm0 = vmmov 0   ;;  %vm32_vm1 = vcmask 261120   ;;  %v30_v1 = vld [vmem:[#allocation3] sm:$0xff]  ;;  %v31_v3 = vstv %s254_s2 }
  0x13   :  { %137 = vmatprep.subr.mxu0 %v199_v0  ;;  %139 = vmatprep.mubr.msk.f32.mxu0 %vm200_vm0, %v199_v0  ;;  %v29_v2 = vld [vmem:[%s253_s1] sm:$0x1]  ;;  %s201_s0 = smov [#allocation6]   ;;  %vm115_vm2 = vcmask 57344  }
  0x14   :  { %138 = vmatpush3.xpose.msk.msra.mxu0 %vm32_vm1, %v30_v1  ;;  %s123_s28 = sshll.u32 %s201_s0, 4  ;;  %s124_s28 = int_to_ptr.vmem [resolvable:$true] %s123_s28 }
  0x15   :  { %s172_s1 = scalar_lea.vmem %s124_s28, 16  ;;  %s176_s29 = scalar_lea.vmem %s124_s28, 32 }
  0x16   :  { %p173_p8 = scmp.ne.s32.totalorder %s124_s28, %s172_s1  ;;  %p177_p9 = scmp.lt.s32.totalorder %s124_s28, %s124_s28 }
  0x17   :  { %140 = vmatmul.mubr.msk.f32.vlgmr.msra.gmra.mrb[0].mxu0 %vm32_vm1, %v29_v2  ;;  %p178_p10 = scmp.lt.s32.totalorder %s176_s29, %s172_s1 }
  0x19   :  { %p179_p11 = por %p178_p10, %p177_p9 }
  0x1b   :  { %p180_p12 = pnand %p179_p11, %p173_p8 }
  0xea   :  { %v105_v4 = vpop.f32.mrb[0].mxu0 }
  0xeb   :  { %v106_v5 = vadd.f32 %v105_v4, %v31_v3  ;;  %v141_v6 = vpop.f32.mrb[1].mxu0 }
  0xed   :  { %v134_v7 = vmul.f32 -1.442695, %v106_v5 }
  0xef   :  { %146 = vpow2.f32 %v134_v7 }
  0xf9   :  { %v147_v8 = vpop.eup %146 }
  0xfa   :  { %v112_v9 = vadd.f32 1.0, %v147_v8 }
  0xfc   :  { %148 = vrcp.f32 %v112_v9 }
 0x106   :  { %v149_v10 = vpop.eup %148 }
 0x107   :  { %116 = vst.msk [vmem:[#allocation6] sm:$0x1] %vm115_vm2, %v149_v10 }
 0x108   :  { %183 = shalt.err (!%p180_p12)
}
 0x109   :  { %s184_s4 = scalar_lea.hbm %s255_s3, 16 }
 0x10a   :  { %p185_p13 = scmp.ne.s32.totalorder %s255_s3, %s184_s4  ;;  %p188_p0 = scmp.lt.u32.totalorder %s184_s4, %s255_s3 }
 0x10c   :  { %p190_p1 = pnand %p188_p0, %p185_p13 }
 0x10e   :  { %193 = shalt.err (!%p190_p1)
}
 0x10f   :  { %126 = dma.vmem_to_hbm [thread:$0]  %s124_s28, 16, %s255_s3, [#allocation5]  }
 0x110   :  { %196 = dma.done.wait [#allocation5], 16  }
 0x111   :  { %197 = vsyncadd [#allocation5], 4294967280 }
 0x112   :  { %130 = vsyncpa [#allocation4], 1 }
 0x113   :  { %131 = vsyncpa [#allocation5], 1 }

</bundles_post_ra>
